<compile_context>
chip_gen: v5e
topology: v5e:2x2
jax: 0.10.0
libtpu: 0.0.40
codegen_flags: <defaults>
</compile_context>

<pallas_src>
import functools

import jax
import jax.numpy as jnp
from jax.experimental import pallas as pl
from jax.experimental.pallas import tpu as pltpu

FEATURES = ['fposx', 'gaze', 'firlp', 'laslp', 'fixdur', 'osacdur',
            'osacdx', 'osacdy', 'osacl', 'isacdur', 'isacdx', 'isacdy']
IN_DIM = 768
ENC_DIM = 20
OUT_DIM = len(FEATURES)  # 12
LANE = 128               # TPU lane width; ENC/OUT dims are padded up to this


def meandiff_kernel(x_ref, w1_ref, b1_ref, w2_ref, b2_ref, o_ref):
    # encoding = relu(x @ W1 + b1)   (all feature dims lane-padded to 128)
    h = jnp.dot(x_ref[...], w1_ref[...], preferred_element_type=jnp.float32)
    h = jnp.maximum(h + b1_ref[...], 0.0)        # bias broadcast + ReLU on the VPU
    # output = encoding @ W2 + b2
    out = jnp.dot(h, w2_ref[...], preferred_element_type=jnp.float32)
    o_ref[...] = (out + b2_ref[...]).astype(o_ref.dtype)


def _pad_params(w1, b1, w2, b2):
    """Zero-pad the narrow (20 / 12) dims up to the 128-lane width."""
    w1p = jnp.zeros((IN_DIM, LANE), jnp.float32).at[:, :ENC_DIM].set(w1)
    b1p = jnp.zeros((1, LANE), jnp.float32).at[:, :ENC_DIM].set(b1.reshape(1, ENC_DIM))
    w2p = jnp.zeros((LANE, LANE), jnp.float32).at[:ENC_DIM, :OUT_DIM].set(w2)
    b2p = jnp.zeros((1, LANE), jnp.float32).at[:, :OUT_DIM].set(b2.reshape(1, OUT_DIM))
    return w1p, b1p, w2p, b2p


@functools.partial(jax.jit, static_argnames=("tb",))
def meandiff_encoder(x, w1, b1, w2, b2, *, tb=1024):
    """x: (B, 768) float32.  Returns (B, 12) float32."""
    B = x.shape[0]
    w1p, b1p, w2p, b2p = _pad_params(w1, b1, w2, b2)

    # Batch tile: multiple of 8, capped at `tb` (sweepable 512-2048); pad B up to a
    # multiple of the tile so the (8,128) BlockSpec rule always holds.
    TB = min(tb, max(8, pl.cdiv(B, 8) * 8))
    B_pad = pl.cdiv(B, TB) * TB
    if B_pad != B:
        x = jnp.pad(x, ((0, B_pad - B), (0, 0)))

    grid = (B_pad // TB,)
    cost = pl.CostEstimate(
        flops=2 * B_pad * IN_DIM * LANE + 2 * B_pad * LANE * LANE,
        transcendentals=0,
        bytes_accessed=4 * (B_pad * IN_DIM            # x read
                            + IN_DIM * LANE + LANE * LANE + 2 * LANE  # weights/biases
                            + B_pad * LANE),          # output write
    )

    out_pad = pl.pallas_call(
        meandiff_kernel,
        out_shape=jax.ShapeDtypeStruct((B_pad, LANE), jnp.float32),
        grid=grid,
        in_specs=[
            pl.BlockSpec((TB, IN_DIM), lambda i: (i, 0)),     # x: streamed per batch tile
            pl.BlockSpec((IN_DIM, LANE), lambda i: (0, 0)),   # W1: resident
            pl.BlockSpec((1, LANE), lambda i: (0, 0)),        # b1: resident
            pl.BlockSpec((LANE, LANE), lambda i: (0, 0)),     # W2: resident
            pl.BlockSpec((1, LANE), lambda i: (0, 0)),        # b2: resident
        ],
        out_specs=pl.BlockSpec((TB, LANE), lambda i: (i, 0)),
        compiler_params=pltpu.CompilerParams(
            dimension_semantics=("parallel",)),
        cost_estimate=cost,
    )(x, w1p, b1p, w2p, b2p)

    # Strip batch padding and lane padding.
    return out_pad[:B, :OUT_DIM]


def init_params(key):
    """Deterministic init mimicking torch.nn.Linear default (uniform(-1/sqrt(fan_in), +))."""
    k1, k2, k3, k4 = jax.random.split(key, 4)
    lim1 = 1.0 / jnp.sqrt(IN_DIM)
    lim2 = 1.0 / jnp.sqrt(ENC_DIM)
    # stored as (in, out) so the kernel computes x @ W (torch stores (out, in))
    w1 = jax.random.uniform(k1, (IN_DIM, ENC_DIM), jnp.float32, -lim1, lim1)
    b1 = jax.random.uniform(k2, (ENC_DIM,), jnp.float32, -lim1, lim1)
    w2 = jax.random.uniform(k3, (ENC_DIM, OUT_DIM), jnp.float32, -lim2, lim2)
    b2 = jax.random.uniform(k4, (OUT_DIM,), jnp.float32, -lim2, lim2)
    return w1, b1, w2, b2


def reference(x, w1, b1, w2, b2):
    h = jax.nn.relu(x @ w1 + b1)
    return h @ w2 + b2


if __name__ == "__main__":
    key = jax.random.PRNGKey(0)
    kx, kp = jax.random.split(key)
    w1, b1, w2, b2 = init_params(kp)

    # Small test (B=8) plus a ragged batch to exercise tiling/padding paths.
    ok = True
    for B in (8, 300):
        x = jax.random.normal(jax.random.fold_in(kx, B), (B, IN_DIM), jnp.float32)
        out = jax.block_until_ready(meandiff_encoder(x, w1, b1, w2, b2, tb=256))
        ref = reference(x, w1, b1, w2, b2)
        ok &= out.shape == (B, OUT_DIM)
        ok &= bool(jnp.allclose(out, ref, atol=1e-4, rtol=1e-4))
    assert ok, "mismatch vs reference"
    print("KERNEL_OK")
</pallas_src>

<mosaic_0001>
module attributes {stable_mosaic.version = 11 : i64} {
  func.func @meandiff_kernel(%arg0: i32, %arg1: memref<8x768xf32, #tpu.memory_space<vmem>>, %arg2: memref<768x128xf32, #tpu.memory_space<vmem>>, %arg3: memref<1x128xf32, #tpu.memory_space<vmem>>, %arg4: memref<128x128xf32, #tpu.memory_space<vmem>>, %arg5: memref<1x128xf32, #tpu.memory_space<vmem>>, %arg6: memref<8x128xf32, #tpu.memory_space<vmem>>) attributes {dimension_semantics = [#tpu.dimension_semantics<parallel>], iteration_bounds = array<i64: 1>, scalar_prefetch = 0 : i64, scratch_operands = 0 : i64, tpu.core_type = #tpu.core_type<tc>, window_params = [{transform_indices = @transform_0, window_bounds = array<i64: 8, 768>}, {pipeline_mode = #tpu.pipeline_mode<synchronous>, transform_indices = @transform_1, window_bounds = array<i64: 768, 128>}, {pipeline_mode = #tpu.pipeline_mode<synchronous>, transform_indices = @transform_2, window_bounds = array<i64: 1, 128>}, {pipeline_mode = #tpu.pipeline_mode<synchronous>, transform_indices = @transform_3, window_bounds = array<i64: 128, 128>}, {pipeline_mode = #tpu.pipeline_mode<synchronous>, transform_indices = @transform_4, window_bounds = array<i64: 1, 128>}, {transform_indices = @transform_5, window_bounds = array<i64: 8, 128>}]} {
    %c0 = arith.constant 0 : index
    %c0_0 = arith.constant 0 : index
    %0 = vector.load %arg1[%c0, %c0_0] : memref<8x768xf32, #tpu.memory_space<vmem>>, vector<8x768xf32>
    %c0_1 = arith.constant 0 : index
    %c0_2 = arith.constant 0 : index
    %1 = vector.load %arg2[%c0_1, %c0_2] : memref<768x128xf32, #tpu.memory_space<vmem>>, vector<768x128xf32>
    %cst = arith.constant dense<0.000000e+00> : vector<8x128xf32>
    %2 = tpu.matmul %0, %1, %cst {dimension_numbers = #tpu.dot_dimension_numbers<[1], [0], [0], [1], [0, 0, 1, 1], [], []>} : vector<8x768xf32>, vector<768x128xf32>, vector<8x128xf32> -> vector<8x128xf32>
    %c0_3 = arith.constant 0 : index
    %c0_4 = arith.constant 0 : index
    %3 = vector.load %arg3[%c0_3, %c0_4] : memref<1x128xf32, #tpu.memory_space<vmem>>, vector<1x128xf32>
    %4 = vector.broadcast %3 : vector<1x128xf32> to vector<8x128xf32>
    %5 = arith.addf %2, %4 : vector<8x128xf32>
    %cst_5 = arith.constant 0.000000e+00 : f32
    %6 = vector.broadcast %cst_5 : f32 to vector<8x128xf32>
    %7 = arith.maximumf %5, %6 : vector<8x128xf32>
    %c0_6 = arith.constant 0 : index
    %c0_7 = arith.constant 0 : index
    %8 = vector.load %arg4[%c0_6, %c0_7] : memref<128x128xf32, #tpu.memory_space<vmem>>, vector<128x128xf32>
    %cst_8 = arith.constant dense<0.000000e+00> : vector<8x128xf32>
    %9 = tpu.matmul %7, %8, %cst_8 {dimension_numbers = #tpu.dot_dimension_numbers<[1], [0], [0], [1], [0, 0, 1, 1], [], []>} : vector<8x128xf32>, vector<128x128xf32>, vector<8x128xf32> -> vector<8x128xf32>
    %c0_9 = arith.constant 0 : index
    %c0_10 = arith.constant 0 : index
    %10 = vector.load %arg5[%c0_9, %c0_10] : memref<1x128xf32, #tpu.memory_space<vmem>>, vector<1x128xf32>
    %11 = vector.broadcast %10 : vector<1x128xf32> to vector<8x128xf32>
    %12 = arith.addf %9, %11 : vector<8x128xf32>
    %c0_11 = arith.constant 0 : index
    %c0_12 = arith.constant 0 : index
    %13 = vector.load %arg6[%c0_11, %c0_12] : memref<8x128xf32, #tpu.memory_space<vmem>>, vector<8x128xf32>
    tpu.vector_store %arg6[%c0_11, %c0_12], %12 {strides = array<i32>} : memref<8x128xf32, #tpu.memory_space<vmem>>, vector<8x128xf32>,
    return
  }
  func.func @transform_0(%arg0: i32) -> (i32, i32) {
    %c0_i32 = arith.constant 0 : i32
    %c0_i32_0 = arith.constant 0 : i32
    return %arg0, %c0_i32 : i32, i32
  }
  func.func @transform_1(%arg0: i32) -> (i32, i32) {
    %c0_i32 = arith.constant 0 : i32
    %c0_i32_0 = arith.constant 0 : i32
    %c0_i32_1 = arith.constant 0 : i32
    return %c0_i32, %c0_i32_0 : i32, i32
  }
  func.func @transform_2(%arg0: i32) -> (i32, i32) {
    %c0_i32 = arith.constant 0 : i32
    %c0_i32_0 = arith.constant 0 : i32
    %c0_i32_1 = arith.constant 0 : i32
    return %c0_i32, %c0_i32_0 : i32, i32
  }
  func.func @transform_3(%arg0: i32) -> (i32, i32) {
    %c0_i32 = arith.constant 0 : i32
    %c0_i32_0 = arith.constant 0 : i32
    %c0_i32_1 = arith.constant 0 : i32
    return %c0_i32, %c0_i32_0 : i32, i32
  }
  func.func @transform_4(%arg0: i32) -> (i32, i32) {
    %c0_i32 = arith.constant 0 : i32
    %c0_i32_0 = arith.constant 0 : i32
    %c0_i32_1 = arith.constant 0 : i32
    return %c0_i32, %c0_i32_0 : i32, i32
  }
  func.func @transform_5(%arg0: i32) -> (i32, i32) {
    %c0_i32 = arith.constant 0 : i32
    %c0_i32_0 = arith.constant 0 : i32
    return %arg0, %c0_i32 : i32, i32
  }
}

</mosaic_0001>

<bundles_post_ra>
// kernel: meandiff_encoder.1
= control target key start
LH: loop header
LB: loop body
LE: loop exit
PB: predicated region body
PF: predicated region fallthrough
CT: control target
= control target key end

     0   :  { %s728_s0 = inlined_call_operand.vmem [shape: f32[8,768], index: 0, kind: input, shape index: {}]   ;;  %s729_s1 = inlined_call_operand.vmem [shape: f32[768,128], index: 1, kind: input, shape index: {}]   ;;  %s730_s2 = inlined_call_operand.vmem [shape: f32[1,128], index: 2, kind: input, shape index: {}]   ;;  %s731_s3 = inlined_call_operand.vmem [shape: f32[128,128], index: 3, kind: input, shape index: {}]   ;;  %s732_s4 = inlined_call_operand.vmem [shape: f32[1,128], index: 4, kind: input, shape index: {}]   ;;  %s733_s5 = inlined_call_operand.hbm [shape: f32[8,128], index: 5, kind: output, shape index: {}]  }
   0x1   :  { %v42_v0 = vld [vmem:[%s729_s1 + $0x78] sm:$0xff]  ;;  %v41_v1 = vld [vmem:[%s729_s1 + $0x70] sm:$0xff]  ;;  %v40_v4 = vld [vmem:[%s729_s1 + $0x68] sm:$0xff] }
   0x2   :  { %v58_v2 = vld [vmem:[%s729_s1 + $0xf8] sm:$0xff]  ;;  %127 = vmatpush.msra.mxu0 %v42_v0  ;;  %v57_v3 = vld [vmem:[%s729_s1 + $0xf0] sm:$0xff]  ;;  %v56_v5 = vld [vmem:[%s729_s1 + $0xe8] sm:$0xff] }
   0x3   :  { %147 = vmatpush.msra.mxu1 %v58_v2  ;;  %v39_v6 = vld [vmem:[%s729_s1 + $0x60] sm:$0xff]  ;;  %v38_v8 = vld [vmem:[%s729_s1 + $0x58] sm:$0xff]  ;;  %v37_v10 = vld [vmem:[%s729_s1 + $0x50] sm:$0xff] }
   0x4   :  { %128 = vmatpush.msra.mxu0 %v41_v1  ;;  %v55_v7 = vld [vmem:[%s729_s1 + $0xe0] sm:$0xff]  ;;  %v54_v9 = vld [vmem:[%s729_s1 + $0xd8] sm:$0xff]  ;;  %v53_v12 = vld [vmem:[%s729_s1 + $0xd0] sm:$0xff] }
   0x5   :  { %148 = vmatpush.msra.mxu1 %v57_v3  ;;  %v74_v11 = vld [vmem:[%s729_s1 + $0x178] sm:$0xff]  ;;  %v73_v13 = vld [vmem:[%s729_s1 + $0x170] sm:$0xff]  ;;  %v72_v15 = vld [vmem:[%s729_s1 + $0x168] sm:$0xff] }
   0x6   :  { %129 = vmatpush.msra.mxu0 %v40_v4  ;;  %167 = vmatpush.msra.mxu2 %v74_v11  ;;  %v90_v14 = vld [vmem:[%s729_s1 + $0x1f8] sm:$0xff]  ;;  %v89_v16 = vld [vmem:[%s729_s1 + $0x1f0] sm:$0xff]  ;;  %v36_v17 = vld [vmem:[%s729_s1 + $0x48] sm:$0xff] }
   0x7   :  { %149 = vmatpush.msra.mxu1 %v56_v5  ;;  %v52_v18 = vld [vmem:[%s729_s1 + $0xc8] sm:$0xff]  ;;  %187 = vmatpush.msra.mxu3 %v90_v14  ;;  %v71_v19 = vld [vmem:[%s729_s1 + $0x160] sm:$0xff]  ;;  %v70_v23 = vld [vmem:[%s729_s1 + $0x158] sm:$0xff] }
   0x8   :  { %130 = vmatpush.msra.mxu0 %v39_v6  ;;  %168 = vmatpush.msra.mxu2 %v73_v13  ;;  %v88_v20 = vld [vmem:[%s729_s1 + $0x1e8] sm:$0xff]  ;;  %v35_v21 = vld [vmem:[%s729_s1 + $0x40] sm:$0xff]  ;;  %v34_v25 = vld [vmem:[%s729_s1 + $0x38] sm:$0xff] }
   0x9   :  { %150 = vmatpush.msra.mxu1 %v55_v7  ;;  %v51_v22 = vld [vmem:[%s729_s1 + $0xc0] sm:$0xff]  ;;  %188 = vmatpush.msra.mxu3 %v89_v16  ;;  %v50_v26 = vld [vmem:[%s729_s1 + $0xb8] sm:$0xff]  ;;  %v69_v27 = vld [vmem:[%s729_s1 + $0x150] sm:$0xff] }
   0xa   :  { %131 = vmatpush.msra.mxu0 %v38_v8  ;;  %169 = vmatpush.msra.mxu2 %v72_v15  ;;  %v87_v24 = vld [vmem:[%s729_s1 + $0x1e0] sm:$0xff]  ;;  %v86_v28 = vld [vmem:[%s729_s1 + $0x1d8] sm:$0xff]  ;;  %v33_v29 = vld [vmem:[%s729_s1 + $0x30] sm:$0xff] }
   0xb   :  { %151 = vmatpush.msra.mxu1 %v54_v9  ;;  %189 = vmatpush.msra.mxu3 %v88_v20  ;;  %v49_v30 = vld [vmem:[%s729_s1 + $0xb0] sm:$0xff]  ;;  %v68_v31 = vld [vmem:[%s729_s1 + $0x148] sm:$0xff]  ;;  %v67_v35 = vld [vmem:[%s729_s1 + $0x140] sm:$0xff] }
   0xc   :  { %132 = vmatpush.msra.mxu0 %v37_v10  ;;  %170 = vmatpush.msra.mxu2 %v71_v19  ;;  %v85_v32 = vld [vmem:[%s729_s1 + $0x1d0] sm:$0xff]  ;;  %v32_v33 = vld [vmem:[%s729_s1 + $0x28] sm:$0xff]  ;;  %v31_v37 = vld [vmem:[%s729_s1 + $0x20] sm:$0xff] }
   0xd   :  { %152 = vmatpush.msra.mxu1 %v53_v12  ;;  %190 = vmatpush.msra.mxu3 %v87_v24  ;;  %v48_v34 = vld [vmem:[%s729_s1 + $0xa8] sm:$0xff]  ;;  %v47_v38 = vld [vmem:[%s729_s1 + $0xa0] sm:$0xff]  ;;  %v66_v39 = vld [vmem:[%s729_s1 + $0x138] sm:$0xff] }
   0xe   :  { %133 = vmatpush.msra.mxu0 %v36_v17  ;;  %171 = vmatpush.msra.mxu2 %v70_v23  ;;  %v84_v36 = vld [vmem:[%s729_s1 + $0x1c8] sm:$0xff]  ;;  %v83_v40 = vld [vmem:[%s729_s1 + $0x1c0] sm:$0xff]  ;;  %v30_v41 = vld [vmem:[%s729_s1 + $0x18] sm:$0xff] }
   0xf   :  { %153 = vmatpush.msra.mxu1 %v52_v18  ;;  %191 = vmatpush.msra.mxu3 %v86_v28  ;;  %v46_v42 = vld [vmem:[%s729_s1 + $0x98] sm:$0xff]  ;;  %v65_v43 = vld [vmem:[%s729_s1 + $0x130] sm:$0xff]  ;;  %v64_v47 = vld [vmem:[%s729_s1 + $0x128] sm:$0xff] }
  0x10   :  { %134 = vmatpush.msra.mxu0 %v35_v21  ;;  %172 = vmatpush.msra.mxu2 %v69_v27  ;;  %v82_v44 = vld [vmem:[%s729_s1 + $0x1b8] sm:$0xff]  ;;  %v29_v45 = vld [vmem:[%s729_s1 + $0x10] sm:$0xff]  ;;  %v28_v49 = vld [vmem:[%s729_s1 + $0x8] sm:$0xff] }
  0x11   :  { %154 = vmatpush.msra.mxu1 %v51_v22  ;;  %192 = vmatpush.msra.mxu3 %v85_v32  ;;  %v45_v46 = vld [vmem:[%s729_s1 + $0x90] sm:$0xff]  ;;  %v44_v50 = vld [vmem:[%s729_s1 + $0x88] sm:$0xff]  ;;  %v63_v51 = vld [vmem:[%s729_s1 + $0x120] sm:$0xff] }
  0x12   :  { %135 = vmatpush.msra.mxu0 %v34_v25  ;;  %173 = vmatpush.msra.mxu2 %v68_v31  ;;  %v81_v48 = vld [vmem:[%s729_s1 + $0x1b0] sm:$0xff]  ;;  %v80_v52 = vld [vmem:[%s729_s1 + $0x1a8] sm:$0xff]  ;;  %v27_v53 = vld [vmem:[%s729_s1] sm:$0xff] }
  0x13   :  { %155 = vmatpush.msra.mxu1 %v50_v26  ;;  %193 = vmatpush.msra.mxu3 %v84_v36  ;;  %v43_v54 = vld [vmem:[%s729_s1 + $0x80] sm:$0xff]  ;;  %v106_v55 = vld [vmem:[%s729_s1 + $0x278] sm:$0xff]  ;;  %v105_v59 = vld [vmem:[%s729_s1 + $0x270] sm:$0xff] }
  0x14   :  { %136 = vmatpush.msra.mxu0 %v33_v29  ;;  %174 = vmatpush.msra.mxu2 %v67_v35  ;;  %v122_v56 = vld [vmem:[%s729_s1 + $0x2f8] sm:$0xff]  ;;  %v79_v58 = vld [vmem:[%s729_s1 + $0x1a0] sm:$0xff]  ;;  %v121_v60 = vld [vmem:[%s729_s1 + $0x2f0] sm:$0xff] }
  0x15   :  { %156 = vmatpush.msra.mxu1 %v49_v30  ;;  %194 = vmatpush.msra.mxu3 %v83_v40  ;;  %v62_v57 = vld [vmem:[%s729_s1 + $0x118] sm:$0xff]  ;;  %v61_v61 = vld [vmem:[%s729_s1 + $0x110] sm:$0xff]  ;;  %v104_v63 = vld [vmem:[%s729_s1 + $0x268] sm:$0xff] }
  0x16   :  { %137 = vmatpush.msra.mxu0 %v32_v33  ;;  %175 = vmatpush.msra.mxu2 %v66_v39  ;;  %v78_v62 = vld [vmem:[%s729_s1 + $0x198] sm:$0xff]  ;;  %v120_v0 = vld [vmem:[%s729_s1 + $0x2e8] sm:$0xff]  ;;  %v77_v2 = vld [vmem:[%s729_s1 + $0x190] sm:$0xff] }
  0x17   :  { %157 = vmatpush.msra.mxu1 %v48_v34  ;;  %195 = vmatpush.msra.mxu3 %v82_v44  ;;  %v60_v1 = vld [vmem:[%s729_s1 + $0x108] sm:$0xff]  ;;  %v103_v3 = vld [vmem:[%s729_s1 + $0x260] sm:$0xff]  ;;  %v102_v4 = vld [vmem:[%s729_s1 + $0x258] sm:$0xff] }
  0x18   :  { %138 = vmatpush.msra.mxu0 %v31_v37  ;;  %176 = vmatpush.msra.mxu2 %v65_v43  ;;  %v119_v5 = vld [vmem:[%s729_s1 + $0x2e0] sm:$0xff]  ;;  %v76_v7 = vld [vmem:[%s729_s1 + $0x188] sm:$0xff]  ;;  %v118_v8 = vld [vmem:[%s729_s1 + $0x2d8] sm:$0xff] }
  0x19   :  { %158 = vmatpush.msra.mxu1 %v47_v38  ;;  %196 = vmatpush.msra.mxu3 %v81_v48  ;;  %v59_v6 = vld [vmem:[%s729_s1 + $0x100] sm:$0xff] }
  0x1a   :  { %139 = vmatpush.msra.mxu0 %v30_v41  ;;  %177 = vmatpush.msra.mxu2 %v64_v47 }
  0x1b   :  { %159 = vmatpush.msra.mxu1 %v46_v42  ;;  %197 = vmatpush.msra.mxu3 %v80_v52 }
  0x1c   :  { %140 = vmatpush.msra.mxu0 %v29_v45  ;;  %178 = vmatpush.msra.mxu2 %v63_v51 }
  0x1d   :  { %160 = vmatpush.msra.mxu1 %v45_v46  ;;  %198 = vmatpush.msra.mxu3 %v79_v58 }
  0x1e   :  { %141 = vmatpush.msra.mxu0 %v28_v49  ;;  %179 = vmatpush.msra.mxu2 %v62_v57 }
  0x1f   :  { %161 = vmatpush.msra.mxu1 %v44_v50  ;;  %199 = vmatpush.msra.mxu3 %v78_v62 }
  0x20   :  { %142 = vmatpush.msra.mxu0 %v27_v53  ;;  %180 = vmatpush.msra.mxu2 %v61_v61 }
  0x21   :  { %162 = vmatpush.msra.mxu1 %v43_v54  ;;  %200 = vmatpush.msra.mxu3 %v77_v2 }
  0x22   :  { %207 = vmatpush.msrb.mxu0 %v106_v55  ;;  %181 = vmatpush.msra.mxu2 %v60_v1 }
  0x23   :  { %227 = vmatpush.msrb.mxu1 %v122_v56 }
  0x24   :  { %208 = vmatpush.msrb.mxu0 %v105_v59 }
  0x25   :  { %228 = vmatpush.msrb.mxu1 %v121_v60 }
  0x26   :  { %209 = vmatpush.msrb.mxu0 %v104_v63 }
  0x27   :  { %229 = vmatpush.msrb.mxu1 %v120_v0 }
  0x28   :  { %10 = vsyncpa [#allocation3], 0  ;;  %210 = vmatpush.msrb.mxu0 %v103_v3  ;;  %v23_v9 = vld [vmem:[%s728_s0 + $0x10] sm:$0xff]  ;;  %v75_v10 = vld [vmem:[%s729_s1 + $0x180] sm:$0xff]  ;;  %182 = vmatpush.msra.mxu2 %v59_v6  ;;  %s334_s30 = smov [#allocation2]   ;;  %s296_s8 = sshll.u32 %s733_s5, 4  ;;  %s297_s8 = int_to_ptr.hbm [resolvable:$true] %s296_s8 }
  0x29   :  { %230 = vmatpush.msrb.mxu1 %v119_v5  ;;  %v101_v11 = vld [vmem:[%s729_s1 + $0x250] sm:$0xff]  ;;  %201 = vmatpush.msra.mxu3 %v76_v7  ;;  %v21_v13 = vld [vmem:[%s728_s0] sm:$0xff]  ;;  %v24_v14 = vld [vmem:[%s728_s0 + $0x18] sm:$0xff] }
  0x2a   :  { %v117_v12 = vld [vmem:[%s729_s1 + $0x2d0] sm:$0xff]  ;;  %211 = vmatpush.msrb.mxu0 %v102_v4  ;;  %v100_v15 = vld [vmem:[%s729_s1 + $0x248] sm:$0xff]  ;;  %183 = vmatmul.f32.vlgmr.msra.gmra.mxu2 %v23_v9  ;;  %v263_v18 = vld [vmem:[%s731_s3 + $0x78] sm:$0xff] }
  0x2b   :  { %231 = vmatpush.msrb.mxu1 %v118_v8  ;;  %v116_v16 = vld [vmem:[%s729_s1 + $0x2c8] sm:$0xff]  ;;  %202 = vmatpush.msra.mxu3 %v75_v10  ;;  %v99_v19 = vld [vmem:[%s729_s1 + $0x240] sm:$0xff]  ;;  %v262_v21 = vld [vmem:[%s731_s3 + $0x70] sm:$0xff] }
  0x2c   :  { %212 = vmatpush.msrb.mxu0 %v101_v11  ;;  %v22_v17 = vld [vmem:[%s728_s0 + $0x8] sm:$0xff]  ;;  %v115_v20 = vld [vmem:[%s729_s1 + $0x2c0] sm:$0xff]  ;;  %203 = vmatmul.f32.vlgmr.msra.gmra.mxu3 %v24_v14  ;;  %v98_v22 = vld [vmem:[%s729_s1 + $0x238] sm:$0xff] }
  0x2d   :  { %232 = vmatpush.msrb.mxu1 %v117_v12  ;;  %143 = vmatmul.f32.vlgmr.msra.gmra.mxu0 %v21_v13  ;;  %v114_v23 = vld [vmem:[%s729_s1 + $0x2b8] sm:$0xff]  ;;  %v261_v24 = vld [vmem:[%s731_s3 + $0x68] sm:$0xff]  ;;  %v97_v25 = vld [vmem:[%s729_s1 + $0x230] sm:$0xff] }
  0x2e   :  { %213 = vmatpush.msrb.mxu0 %v100_v15  ;;  %163 = vmatmul.f32.vlgmr.msra.gmra.mxu1 %v22_v17  ;;  %v113_v26 = vld [vmem:[%s729_s1 + $0x2b0] sm:$0xff]  ;;  %v260_v27 = vld [vmem:[%s731_s3 + $0x60] sm:$0xff]  ;;  %v96_v28 = vld [vmem:[%s729_s1 + $0x228] sm:$0xff] }
  0x2f   :  { %233 = vmatpush.msrb.mxu1 %v116_v16  ;;  %268 = vmatpush.msrb.mxu2 %v263_v18  ;;  %v112_v29 = vld [vmem:[%s729_s1 + $0x2a8] sm:$0xff]  ;;  %v259_v30 = vld [vmem:[%s731_s3 + $0x58] sm:$0xff]  ;;  %v95_v31 = vld [vmem:[%s729_s1 + $0x220] sm:$0xff] }
  0x30   :  { %214 = vmatpush.msrb.mxu0 %v99_v19  ;;  %v111_v32 = vld [vmem:[%s729_s1 + $0x2a0] sm:$0xff]  ;;  %v258_v33 = vld [vmem:[%s731_s3 + $0x50] sm:$0xff]  ;;  %v94_v34 = vld [vmem:[%s729_s1 + $0x218] sm:$0xff] }
  0x31   :  { %234 = vmatpush.msrb.mxu1 %v115_v20  ;;  %269 = vmatpush.msrb.mxu2 %v262_v21  ;;  %v110_v35 = vld [vmem:[%s729_s1 + $0x298] sm:$0xff]  ;;  %v257_v36 = vld [vmem:[%s731_s3 + $0x48] sm:$0xff]  ;;  %v93_v37 = vld [vmem:[%s729_s1 + $0x210] sm:$0xff] }
  0x32   :  { %215 = vmatpush.msrb.mxu0 %v98_v22  ;;  %v109_v38 = vld [vmem:[%s729_s1 + $0x290] sm:$0xff]  ;;  %v256_v39 = vld [vmem:[%s731_s3 + $0x40] sm:$0xff]  ;;  %v92_v40 = vld [vmem:[%s729_s1 + $0x208] sm:$0xff] }
  0x33   :  { %235 = vmatpush.msrb.mxu1 %v114_v23  ;;  %270 = vmatpush.msrb.mxu2 %v261_v24  ;;  %v108_v41 = vld [vmem:[%s729_s1 + $0x288] sm:$0xff]  ;;  %v91_v42 = vld [vmem:[%s729_s1 + $0x200] sm:$0xff]  ;;  %v255_v46 = vld [vmem:[%s731_s3 + $0x38] sm:$0xff] }
  0x34   :  { %216 = vmatpush.msrb.mxu0 %v97_v25  ;;  %v107_v43 = vld [vmem:[%s729_s1 + $0x280] sm:$0xff]  ;;  %v26_v45 = vld [vmem:[%s728_s0 + $0x28] sm:$0xff]  ;;  %v254_v47 = vld [vmem:[%s731_s3 + $0x30] sm:$0xff] }
  0x35   :  { %236 = vmatpush.msrb.mxu1 %v113_v26  ;;  %271 = vmatpush.msrb.mxu2 %v260_v27  ;;  %v25_v44 = vld [vmem:[%s728_s0 + $0x20] sm:$0xff]  ;;  %v253_v48 = vld [vmem:[%s731_s3 + $0x28] sm:$0xff]  ;;  %v251_v50 = vld [vmem:[%s731_s3 + $0x18] sm:$0xff] }
  0x36   :  { %217 = vmatpush.msrb.mxu0 %v96_v28  ;;  %v252_v49 = vld [vmem:[%s731_s3 + $0x20] sm:$0xff]  ;;  %v250_v51 = vld [vmem:[%s731_s3 + $0x10] sm:$0xff]  ;;  %v249_v52 = vld [vmem:[%s731_s3 + $0x8] sm:$0xff] }
  0x37   :  { %237 = vmatpush.msrb.mxu1 %v112_v29  ;;  %272 = vmatpush.msrb.mxu2 %v259_v30  ;;  %v248_v53 = vld [vmem:[%s731_s3] sm:$0xff] }
  0x38   :  { %218 = vmatpush.msrb.mxu0 %v95_v31  ;;  %v306_v54 = vld [vmem:[%s730_s2] ss:$0 sm:$0xff]  ;;  %s294_s2 = sshll.u32 %s334_s30, 4  ;;  %s295_s2 = int_to_ptr.vmem [resolvable:$true] %s294_s2 }
  0x39   :  { %238 = vmatpush.msrb.mxu1 %v111_v32  ;;  %273 = vmatpush.msrb.mxu2 %v258_v33  ;;  %v307_v4 = vld [vmem:[%s732_s4] ss:$0 sm:$0xff] }
  0x3a   :  { %219 = vmatpush.msrb.mxu0 %v94_v34 }
  0x3b   :  { %239 = vmatpush.msrb.mxu1 %v110_v35  ;;  %274 = vmatpush.msrb.mxu2 %v257_v36 }
  0x3c   :  { %220 = vmatpush.msrb.mxu0 %v93_v37 }
  0x3d   :  { %240 = vmatpush.msrb.mxu1 %v109_v38  ;;  %275 = vmatpush.msrb.mxu2 %v256_v39 }
  0x3e   :  { %221 = vmatpush.msrb.mxu0 %v92_v40 }
  0x3f   :  { %241 = vmatpush.msrb.mxu1 %v108_v41  ;;  %276 = vmatpush.msrb.mxu2 %v255_v46 }
  0x40   :  { %222 = vmatpush.msrb.mxu0 %v91_v42 }
  0x41   :  { %242 = vmatpush.msrb.mxu1 %v107_v43  ;;  %223 = vmatmul.f32.vlgmr.msrb.gmra.mxu0 %v25_v44 }
  0x42   :  { %243 = vmatmul.f32.vlgmr.msrb.gmra.mxu1 %v26_v45  ;;  %277 = vmatpush.msrb.mxu2 %v254_v47 }
  0x44   :  { %278 = vmatpush.msrb.mxu2 %v253_v48 }
  0x46   :  { %279 = vmatpush.msrb.mxu2 %v252_v49 }
  0x48   :  { %280 = vmatpush.msrb.mxu2 %v251_v50 }
  0x4a   :  { %281 = vmatpush.msrb.mxu2 %v250_v51 }
  0x4c   :  { %282 = vmatpush.msrb.mxu2 %v249_v52 }
  0x4e   :  { %283 = vmatpush.msrb.mxu2 %v248_v53 }
  0xaa   :  { %v144_v55 = vpop.f32.mrf.mxu0 }
  0xab   :  { %v145_v56 = vadd.f32 %v306_v54, %v144_v55  ;;  %v164_v57 = vpop.f32.mrf.mxu1 }
  0xad   :  { %v165_v58 = vadd.f32 %v164_v57, %v145_v56  ;;  %v184_v59 = vpop.f32.mrf.mxu2 }
  0xaf   :  { %v185_v60 = vadd.f32 %v184_v59, %v165_v58  ;;  %v204_v61 = vpop.f32.mrf.mxu3 }
  0xb1   :  { %v205_v62 = vadd.f32 %v204_v61, %v185_v60 }
  0xbe   :  { %v224_v63 = vpop.f32.mrf.mxu0 }
  0xbf   :  { %v244_v0 = vpop.f32.mrf.mxu1  ;;  %v225_v1 = vadd.f32 %v224_v63, %v205_v62 }
  0xc1   :  { %v245_v2 = vadd.f32 %v244_v0, %v225_v1 }
  0xc3   :  { %v247_v3 = vmax.f32 %v245_v2, 0.0 }
  0xc5   :  { %284 = vmatmul.f32.vlgmr.msrb.gmra.mxu2 %v247_v3 }
 0x148   :  { %v285_v5 = vpop.f32.mrf.mxu2 }
 0x149   :  { %v286_v6 = vadd.f32 %v307_v4, %v285_v5 }
 0x14b   :  { %288 = vst [vmem:[#allocation2] sm:$0xff] %v286_v6 }
 0x14c   :  { %299 = dma.vmem_to_hbm [thread:$0]  %s295_s2, 128, %s297_s8, [#allocation3]  }
 0x14d   :  { %332 = dma.done.wait [#allocation3], 128  }
 0x14e   :  { %333 = vsyncadd [#allocation3], 4294967168 }
 0x14f   :  { %304 = vsyncpa [#allocation3], 1 }

</bundles_post_ra>
